<compile_context>
chip_gen: v5e
topology: v5e:2x2
jax: 0.10.0
libtpu: 0.0.40
codegen_flags: <defaults>
</compile_context>

<pallas_src>
import jax
import jax.numpy as jnp
from jax.experimental import pallas as pl
from jax.experimental.pallas import tpu as pltpu


def _round_up(v, m):
    return (v + m - 1) // m * m


def res_layer_kernel(x_ref, w1_ref, b1_ref, w2_ref, b2_ref, o_ref):
    # x_ref: (tm, Hp), w1_ref: (Hp, Ip), b1_ref: (1, Ip),
    # w2_ref: (Ip, Hp), b2_ref: (1, Hp), o_ref: (tm, Hp)

    # Linear(hidden -> interm): native-dtype operands, f32 accumulate on the MXU.
    h = jnp.dot(x_ref[...], w1_ref[...], preferred_element_type=jnp.float32)
    h = h + b1_ref[...]
    h = h * jax.nn.sigmoid(h)                      # SiLU (sigmoid -> EUP, mul -> VPU)

    # Linear(interm -> hidden): cast the f32 activations back to the weight dtype
    # (bf16 weights => bf16 MXU inputs), f32 accumulate.
    y = jnp.dot(h.astype(w2_ref.dtype), w2_ref[...],
                preferred_element_type=jnp.float32)
    y = y + b2_ref[...]
    y = y * jax.nn.sigmoid(y)                      # SiLU

    # Residual add: re-read x from VMEM (no long-lived f32 copy), fuse cast+store.
    o_ref[...] = (x_ref[...].astype(jnp.float32) + y).astype(o_ref.dtype)


def res_layer(x, w1, b1, w2, b2, *, tm=256):
    """x: (N, H) rows. w1: (H, I), b1: (I,), w2: (I, H), b2: (H,). Returns (N, H)."""
    N, H = x.shape
    I = w1.shape[1]

    # Lane-align feature dims to 128; pad rows up to the row tile.
    Hp = _round_up(H, 128)
    Ip = _round_up(I, 128)
    tm = max(8, min(tm, _round_up(N, 8)))          # don't over-pad tiny inputs
    Np = _round_up(N, tm)

    x_p = jnp.pad(x, ((0, Np - N), (0, Hp - H))) if (Np != N or Hp != H) else x
    w1_p = jnp.pad(w1, ((0, Hp - H), (0, Ip - I)))
    w2_p = jnp.pad(w2, ((0, Ip - I), (0, Hp - H)))
    b1_p = jnp.pad(b1, (0, Ip - I)).reshape(1, Ip).astype(jnp.float32)
    b2_p = jnp.pad(b2, (0, Hp - H)).reshape(1, Hp).astype(jnp.float32)

    # Advisory cost hint for XLA scheduling around the custom call.
    itemsize = jnp.dtype(x.dtype).itemsize
    w_itemsize = jnp.dtype(w1.dtype).itemsize
    cost = pl.CostEstimate(
        flops=2 * 2 * Np * Hp * Ip,
        transcendentals=Np * (Ip + Hp),
        bytes_accessed=(Np * Hp * itemsize * 2            # x in + out
                        + Hp * Ip * w_itemsize * 2        # W1 + W2
                        + (Ip + Hp) * 4),                 # biases
    )

    out_p = pl.pallas_call(
        res_layer_kernel,
        out_shape=jax.ShapeDtypeStruct((Np, Hp), x.dtype),
        grid=(Np // tm,),
        in_specs=[
            pl.BlockSpec((tm, Hp), lambda i: (i, 0)),   # x row tile
            pl.BlockSpec((Hp, Ip), lambda i: (0, 0)),   # W1 (resident)
            pl.BlockSpec((1, Ip), lambda i: (0, 0)),    # b1
            pl.BlockSpec((Ip, Hp), lambda i: (0, 0)),   # W2 (resident)
            pl.BlockSpec((1, Hp), lambda i: (0, 0)),    # b2
        ],
        out_specs=pl.BlockSpec((tm, Hp), lambda i: (i, 0)),
        compiler_params=pltpu.CompilerParams(
            dimension_semantics=("parallel",),
            vmem_limit_bytes=64 * 1024 * 1024,
        ),
        cost_estimate=cost,
    )(x_p, w1_p, b1_p, w2_p, b2_p)

    if Np != N or Hp != H:
        out_p = out_p[:N, :H]
    return out_p


def res_layer_ref(x, w1, b1, w2, b2):
    def silu(v):
        return v * jax.nn.sigmoid(v)
    h = silu(x @ w1 + b1)
    y = silu(h @ w2 + b2)
    return x + y


if __name__ == "__main__":
    # Small shapes implied by the module: tokens of size hidden_dim.
    batch, seq, hidden_dim, interm_dim = 2, 8, 32, 64

    key = jax.random.PRNGKey(0)
    kx, kw1, kb1, kw2, kb2 = jax.random.split(key, 5)

    x = jax.random.normal(kx, (batch, seq, hidden_dim), dtype=jnp.float32)

    # PyTorch Linear weight is (out, in); we store the transpose (in, out) so the
    # kernel computes x @ W + b directly.
    w1 = jax.random.normal(kw1, (hidden_dim, interm_dim), dtype=jnp.float32) * 0.05
    b1 = jax.random.normal(kb1, (interm_dim,), dtype=jnp.float32) * 0.05
    w2 = jax.random.normal(kw2, (interm_dim, hidden_dim), dtype=jnp.float32) * 0.05
    b2 = jax.random.normal(kb2, (hidden_dim,), dtype=jnp.float32) * 0.05

    # Glue: flatten (B, S, H) -> (B*S, H) rows for the kernel, reshape back after.
    x_rows = x.reshape(batch * seq, hidden_dim)
    out_rows = res_layer(x_rows, w1, b1, w2, b2)
    out = out_rows.reshape(batch, seq, hidden_dim)
    jax.block_until_ready(out)

    # Correctness check vs pure-JAX reference (f32 path).
    ref = res_layer_ref(x_rows, w1, b1, w2, b2).reshape(batch, seq, hidden_dim)
    assert jnp.allclose(out, ref, atol=1e-5, rtol=1e-5), "mismatch vs reference (f32)"

    # bf16 path: native bf16 MXU operands with f32 accumulate (loose tolerance).
    xb = x_rows.astype(jnp.bfloat16)
    w1b, w2b = w1.astype(jnp.bfloat16), w2.astype(jnp.bfloat16)
    out_bf16 = res_layer(xb, w1b, b1, w2b, b2)
    jax.block_until_ready(out_bf16)
    ref_bf16 = res_layer_ref(xb.astype(jnp.float32), w1, b1, w2, b2)
    assert jnp.allclose(out_bf16.astype(jnp.float32), ref_bf16, atol=1e-1), \
        "mismatch vs reference (bf16)"

    # drop=0.0 in the default construction -> the Dropout layers are absent (no-op).
    print("KERNEL_OK")
</pallas_src>

<mosaic_0001>
module attributes {stable_mosaic.version = 11 : i64} {
  func.func @res_layer_kernel(%arg0: i32, %arg1: memref<16x128xf32, #tpu.memory_space<vmem>>, %arg2: memref<128x128xf32, #tpu.memory_space<vmem>>, %arg3: memref<1x128xf32, #tpu.memory_space<vmem>>, %arg4: memref<128x128xf32, #tpu.memory_space<vmem>>, %arg5: memref<1x128xf32, #tpu.memory_space<vmem>>, %arg6: memref<16x128xf32, #tpu.memory_space<vmem>>) attributes {dimension_semantics = [#tpu.dimension_semantics<parallel>], iteration_bounds = array<i64: 1>, scalar_prefetch = 0 : i64, scratch_operands = 0 : i64, tpu.core_type = #tpu.core_type<tc>, window_params = [{transform_indices = @transform_0, window_bounds = array<i64: 16, 128>}, {pipeline_mode = #tpu.pipeline_mode<synchronous>, transform_indices = @transform_1, window_bounds = array<i64: 128, 128>}, {pipeline_mode = #tpu.pipeline_mode<synchronous>, transform_indices = @transform_2, window_bounds = array<i64: 1, 128>}, {pipeline_mode = #tpu.pipeline_mode<synchronous>, transform_indices = @transform_3, window_bounds = array<i64: 128, 128>}, {pipeline_mode = #tpu.pipeline_mode<synchronous>, transform_indices = @transform_4, window_bounds = array<i64: 1, 128>}, {transform_indices = @transform_5, window_bounds = array<i64: 16, 128>}]} {
    %c0 = arith.constant 0 : index
    %c0_0 = arith.constant 0 : index
    %0 = vector.load %arg1[%c0, %c0_0] : memref<16x128xf32, #tpu.memory_space<vmem>>, vector<16x128xf32>
    %c0_1 = arith.constant 0 : index
    %c0_2 = arith.constant 0 : index
    %1 = vector.load %arg2[%c0_1, %c0_2] : memref<128x128xf32, #tpu.memory_space<vmem>>, vector<128x128xf32>
    %cst = arith.constant dense<0.000000e+00> : vector<16x128xf32>
    %2 = tpu.matmul %0, %1, %cst {dimension_numbers = #tpu.dot_dimension_numbers<[1], [0], [0], [1], [0, 0, 1, 1], [], []>} : vector<16x128xf32>, vector<128x128xf32>, vector<16x128xf32> -> vector<16x128xf32>
    %c0_3 = arith.constant 0 : index
    %c0_4 = arith.constant 0 : index
    %3 = vector.load %arg3[%c0_3, %c0_4] : memref<1x128xf32, #tpu.memory_space<vmem>>, vector<1x128xf32>
    %4 = vector.broadcast %3 : vector<1x128xf32> to vector<16x128xf32>
    %5 = arith.addf %2, %4 : vector<16x128xf32>
    %6 = arith.negf %5 : vector<16x128xf32>
    %7 = math.exp %6 : vector<16x128xf32>
    %cst_5 = arith.constant 1.000000e+00 : f32
    %8 = vector.broadcast %cst_5 : f32 to vector<16x128xf32>
    %9 = arith.addf %8, %7 : vector<16x128xf32>
    %10 = arith.divf %8, %9 : vector<16x128xf32>
    %11 = arith.mulf %5, %10 : vector<16x128xf32>
    %c0_6 = arith.constant 0 : index
    %c0_7 = arith.constant 0 : index
    %12 = vector.load %arg4[%c0_6, %c0_7] : memref<128x128xf32, #tpu.memory_space<vmem>>, vector<128x128xf32>
    %cst_8 = arith.constant dense<0.000000e+00> : vector<16x128xf32>
    %13 = tpu.matmul %11, %12, %cst_8 {dimension_numbers = #tpu.dot_dimension_numbers<[1], [0], [0], [1], [0, 0, 1, 1], [], []>} : vector<16x128xf32>, vector<128x128xf32>, vector<16x128xf32> -> vector<16x128xf32>
    %c0_9 = arith.constant 0 : index
    %c0_10 = arith.constant 0 : index
    %14 = vector.load %arg5[%c0_9, %c0_10] : memref<1x128xf32, #tpu.memory_space<vmem>>, vector<1x128xf32>
    %15 = vector.broadcast %14 : vector<1x128xf32> to vector<16x128xf32>
    %16 = arith.addf %13, %15 : vector<16x128xf32>
    %17 = arith.negf %16 : vector<16x128xf32>
    %18 = math.exp %17 : vector<16x128xf32>
    %cst_11 = arith.constant 1.000000e+00 : f32
    %19 = vector.broadcast %cst_11 : f32 to vector<16x128xf32>
    %20 = arith.addf %19, %18 : vector<16x128xf32>
    %21 = arith.divf %19, %20 : vector<16x128xf32>
    %22 = arith.mulf %16, %21 : vector<16x128xf32>
    %c0_12 = arith.constant 0 : index
    %c0_13 = arith.constant 0 : index
    %23 = vector.load %arg1[%c0_12, %c0_13] : memref<16x128xf32, #tpu.memory_space<vmem>>, vector<16x128xf32>
    %24 = arith.addf %23, %22 : vector<16x128xf32>
    %c0_14 = arith.constant 0 : index
    %c0_15 = arith.constant 0 : index
    %25 = vector.load %arg6[%c0_14, %c0_15] : memref<16x128xf32, #tpu.memory_space<vmem>>, vector<16x128xf32>
    tpu.vector_store %arg6[%c0_14, %c0_15], %24 {strides = array<i32>} : memref<16x128xf32, #tpu.memory_space<vmem>>, vector<16x128xf32>,
    return
  }
  func.func @transform_0(%arg0: i32) -> (i32, i32) {
    %c0_i32 = arith.constant 0 : i32
    %c0_i32_0 = arith.constant 0 : i32
    return %arg0, %c0_i32 : i32, i32
  }
  func.func @transform_1(%arg0: i32) -> (i32, i32) {
    %c0_i32 = arith.constant 0 : i32
    %c0_i32_0 = arith.constant 0 : i32
    %c0_i32_1 = arith.constant 0 : i32
    return %c0_i32, %c0_i32_0 : i32, i32
  }
  func.func @transform_2(%arg0: i32) -> (i32, i32) {
    %c0_i32 = arith.constant 0 : i32
    %c0_i32_0 = arith.constant 0 : i32
    %c0_i32_1 = arith.constant 0 : i32
    return %c0_i32, %c0_i32_0 : i32, i32
  }
  func.func @transform_3(%arg0: i32) -> (i32, i32) {
    %c0_i32 = arith.constant 0 : i32
    %c0_i32_0 = arith.constant 0 : i32
    %c0_i32_1 = arith.constant 0 : i32
    return %c0_i32, %c0_i32_0 : i32, i32
  }
  func.func @transform_4(%arg0: i32) -> (i32, i32) {
    %c0_i32 = arith.constant 0 : i32
    %c0_i32_0 = arith.constant 0 : i32
    %c0_i32_1 = arith.constant 0 : i32
    return %c0_i32, %c0_i32_0 : i32, i32
  }
  func.func @transform_5(%arg0: i32) -> (i32, i32) {
    %c0_i32 = arith.constant 0 : i32
    %c0_i32_0 = arith.constant 0 : i32
    return %arg0, %c0_i32 : i32, i32
  }
}

</mosaic_0001>

<bundles_post_ra>
// kernel: tpu_custom_call.1
= control target key start
LH: loop header
LB: loop body
LE: loop exit
PB: predicated region body
PF: predicated region fallthrough
CT: control target
= control target key end

     0   :  { %10 = vsyncpa [#allocation3], 0  ;;  %s496_s0 = inlined_call_operand.hbm [shape: f32[16,128], index: 0, kind: input, shape index: {}]   ;;  %s497_s1 = inlined_call_operand.hbm [shape: f32[128,128], index: 1, kind: input, shape index: {}]   ;;  %s498_s2 = inlined_call_operand.vmem [shape: f32[1,128], index: 2, kind: input, shape index: {}]   ;;  %s499_s3 = inlined_call_operand.hbm [shape: f32[128,128], index: 3, kind: input, shape index: {}]   ;;  %s500_s4 = inlined_call_operand.vmem [shape: f32[1,128], index: 4, kind: input, shape index: {}]   ;;  %s501_s5 = inlined_call_operand.hbm [shape: f32[16,128], index: 5, kind: output, shape index: {}]  }
   0x1   :  { %11 = vsyncpa [#allocation6], 0 }
   0x2   :  { %12 = vsyncpa [#allocation4], 0  ;;  %s30_s20 = sshll.u32 %s497_s1, 4  ;;  %s422_s21 = smov [#allocation5]   ;;  %s31_s20 = int_to_ptr.hbm [resolvable:$true] %s30_s20 }
   0x3   :  { %s32_s22 = sshll.u32 %s422_s21, 4  ;;  %s17_s25 = sshll.u32 %s496_s0, 4  ;;  %s33_s22 = int_to_ptr.vmem [resolvable:$true] %s32_s22  ;;  %s18_s25 = int_to_ptr.hbm [resolvable:$true] %s17_s25 }
   0x4   :  { %s423_s26 = smov 128   ;;  %s424_s27 = smov 8  }
   0x5   :  { %38 = dma.hbm_to_vmem [thread:$0]  %s31_s20, 2048, %s33_s22, [#allocation6], %s423_s26, %s423_s26, %s424_s27  }
   0x6   :  { %s425_s28 = smov [#allocation2]   ;;  %s45_s1 = sshll.u32 %s499_s3, 4  ;;  %s46_s1 = int_to_ptr.hbm [resolvable:$true] %s45_s1 }
   0x7   :  { %s19_s29 = sshll.u32 %s425_s28, 4  ;;  %s426_s0 = smov [#allocation7]   ;;  %s20_s29 = int_to_ptr.vmem [resolvable:$true] %s19_s29 }
   0x8   :  { %25 = dma.hbm_to_vmem [thread:$0]  %s18_s25, 256, %s20_s29, [#allocation3], %s423_s26, %s423_s26, %s424_s27  }
   0x9   :  { %s47_s7 = sshll.u32 %s426_s0, 4  ;;  %s48_s7 = int_to_ptr.vmem [resolvable:$true] %s47_s7 }
   0xa   :  { %53 = dma.hbm_to_vmem [thread:$0]  %s46_s1, 2048, %s48_s7, [#allocation6], %s423_s26, %s423_s26, %s424_s27  }
   0xb   :  { %416 = dma.done.wait [#allocation3], 256  }
   0xc   :  { %417 = vsyncadd [#allocation3], 4294967040 }
   0xd   :  { %418 = dma.done.wait [#allocation6], 4096  }
   0xe   :  { %419 = vsyncadd [#allocation6], 4294963200  ;;  %v85_v0 = vld [vmem:[#allocation5 + $0x78] sm:$0xff]  ;;  %v84_v1 = vld [vmem:[#allocation5 + $0x70] sm:$0xff]  ;;  %s246_s13 = sshll.u32 %s501_s5, 4  ;;  %s247_s13 = int_to_ptr.hbm [resolvable:$true] %s246_s13 }
   0xf   :  { %90 = vmatpush.msra.mxu0 %v85_v0  ;;  %264 = vmatpush.msra.mxu2 %v85_v0  ;;  %v83_v2 = vld [vmem:[#allocation5 + $0x68] sm:$0xff]  ;;  %v82_v3 = vld [vmem:[#allocation5 + $0x60] sm:$0xff]  ;;  %v81_v4 = vld [vmem:[#allocation5 + $0x58] sm:$0xff] }
  0x10   :  { %v80_v5 = vld [vmem:[#allocation5 + $0x50] sm:$0xff]  ;;  %v79_v6 = vld [vmem:[#allocation5 + $0x48] sm:$0xff]  ;;  %v78_v7 = vld [vmem:[#allocation5 + $0x40] sm:$0xff] }
  0x11   :  { %91 = vmatpush.msra.mxu0 %v84_v1  ;;  %265 = vmatpush.msra.mxu2 %v84_v1  ;;  %v77_v8 = vld [vmem:[#allocation5 + $0x38] sm:$0xff]  ;;  %v76_v9 = vld [vmem:[#allocation5 + $0x30] sm:$0xff]  ;;  %v75_v10 = vld [vmem:[#allocation5 + $0x28] sm:$0xff] }
  0x12   :  { %v74_v11 = vld [vmem:[#allocation5 + $0x20] sm:$0xff]  ;;  %v73_v12 = vld [vmem:[#allocation5 + $0x18] sm:$0xff]  ;;  %v72_v13 = vld [vmem:[#allocation5 + $0x10] sm:$0xff] }
  0x13   :  { %92 = vmatpush.msra.mxu0 %v83_v2  ;;  %266 = vmatpush.msra.mxu2 %v83_v2  ;;  %v71_v14 = vld [vmem:[#allocation5 + $0x8] sm:$0xff]  ;;  %v70_v15 = vld [vmem:[#allocation5] sm:$0xff]  ;;  %v476_v16 = vld [vmem:[#allocation2] sm:$0xff] }
  0x14   :  { %v478_v17 = vld [vmem:[#allocation2 + $0x8] sm:$0xff]  ;;  %v167_v19 = vld [vmem:[#allocation7 + $0x70] sm:$0xff]  ;;  %v166_v20 = vld [vmem:[#allocation7 + $0x68] sm:$0xff] }
  0x15   :  { %93 = vmatpush.msra.mxu0 %v82_v3  ;;  %267 = vmatpush.msra.mxu2 %v82_v3  ;;  %v168_v18 = vld [vmem:[#allocation7 + $0x78] sm:$0xff]  ;;  %v165_v21 = vld [vmem:[#allocation7 + $0x60] sm:$0xff]  ;;  %v163_v23 = vld [vmem:[#allocation7 + $0x50] sm:$0xff] }
  0x16   :  { %173 = vmatpush.msra.mxu1 %v168_v18  ;;  %280 = vmatpush.msra.mxu3 %v168_v18  ;;  %v164_v22 = vld [vmem:[#allocation7 + $0x58] sm:$0xff]  ;;  %v162_v24 = vld [vmem:[#allocation7 + $0x48] sm:$0xff]  ;;  %v161_v25 = vld [vmem:[#allocation7 + $0x40] sm:$0xff] }
  0x17   :  { %94 = vmatpush.msra.mxu0 %v81_v4  ;;  %268 = vmatpush.msra.mxu2 %v81_v4  ;;  %v160_v26 = vld [vmem:[#allocation7 + $0x38] sm:$0xff]  ;;  %v159_v27 = vld [vmem:[#allocation7 + $0x30] sm:$0xff]  ;;  %v158_v28 = vld [vmem:[#allocation7 + $0x28] sm:$0xff] }
  0x18   :  { %174 = vmatpush.msra.mxu1 %v167_v19  ;;  %281 = vmatpush.msra.mxu3 %v167_v19  ;;  %v157_v29 = vld [vmem:[#allocation7 + $0x20] sm:$0xff]  ;;  %v156_v30 = vld [vmem:[#allocation7 + $0x18] sm:$0xff]  ;;  %v155_v31 = vld [vmem:[#allocation7 + $0x10] sm:$0xff] }
  0x19   :  { %95 = vmatpush.msra.mxu0 %v80_v5  ;;  %269 = vmatpush.msra.mxu2 %v80_v5  ;;  %v154_v32 = vld [vmem:[#allocation7 + $0x8] sm:$0xff]  ;;  %v302_v33 = vld [vmem:[%s498_s2] ss:$0 sm:$0xff]  ;;  %v153_v34 = vld [vmem:[#allocation7] sm:$0xff] }
  0x1a   :  { %175 = vmatpush.msra.mxu1 %v166_v20  ;;  %282 = vmatpush.msra.mxu3 %v166_v20  ;;  %v303_v3 = vld [vmem:[%s500_s4] ss:$0 sm:$0xff]  ;;  %s427_s4 = smov [#allocation8]  }
  0x1b   :  { %96 = vmatpush.msra.mxu0 %v79_v6  ;;  %270 = vmatpush.msra.mxu2 %v79_v6  ;;  %s244_s10 = sshll.u32 %s427_s4, 4  ;;  %s245_s10 = int_to_ptr.vmem [resolvable:$true] %s244_s10 }
  0x1c   :  { %176 = vmatpush.msra.mxu1 %v165_v21  ;;  %283 = vmatpush.msra.mxu3 %v165_v21 }
  0x1d   :  { %97 = vmatpush.msra.mxu0 %v78_v7  ;;  %271 = vmatpush.msra.mxu2 %v78_v7 }
  0x1e   :  { %177 = vmatpush.msra.mxu1 %v164_v22  ;;  %284 = vmatpush.msra.mxu3 %v164_v22 }
  0x1f   :  { %98 = vmatpush.msra.mxu0 %v77_v8  ;;  %272 = vmatpush.msra.mxu2 %v77_v8 }
  0x20   :  { %178 = vmatpush.msra.mxu1 %v163_v23  ;;  %285 = vmatpush.msra.mxu3 %v163_v23 }
  0x21   :  { %99 = vmatpush.msra.mxu0 %v76_v9  ;;  %273 = vmatpush.msra.mxu2 %v76_v9 }
  0x22   :  { %179 = vmatpush.msra.mxu1 %v162_v24  ;;  %286 = vmatpush.msra.mxu3 %v162_v24 }
  0x23   :  { %100 = vmatpush.msra.mxu0 %v75_v10  ;;  %274 = vmatpush.msra.mxu2 %v75_v10 }
  0x24   :  { %180 = vmatpush.msra.mxu1 %v161_v25  ;;  %287 = vmatpush.msra.mxu3 %v161_v25 }
  0x25   :  { %101 = vmatpush.msra.mxu0 %v74_v11  ;;  %275 = vmatpush.msra.mxu2 %v74_v11 }
  0x26   :  { %181 = vmatpush.msra.mxu1 %v160_v26  ;;  %288 = vmatpush.msra.mxu3 %v160_v26 }
  0x27   :  { %102 = vmatpush.msra.mxu0 %v73_v12  ;;  %276 = vmatpush.msra.mxu2 %v73_v12 }
  0x28   :  { %182 = vmatpush.msra.mxu1 %v159_v27  ;;  %289 = vmatpush.msra.mxu3 %v159_v27 }
  0x29   :  { %103 = vmatpush.msra.mxu0 %v72_v13  ;;  %277 = vmatpush.msra.mxu2 %v72_v13 }
  0x2a   :  { %183 = vmatpush.msra.mxu1 %v158_v28  ;;  %290 = vmatpush.msra.mxu3 %v158_v28 }
  0x2b   :  { %104 = vmatpush.msra.mxu0 %v71_v14  ;;  %278 = vmatpush.msra.mxu2 %v71_v14 }
  0x2c   :  { %184 = vmatpush.msra.mxu1 %v157_v29  ;;  %291 = vmatpush.msra.mxu3 %v157_v29 }
  0x2d   :  { %105 = vmatpush.msra.mxu0 %v70_v15  ;;  %279 = vmatpush.msra.mxu2 %v70_v15 }
  0x2e   :  { %106 = vmatmul.f32.vlgmr.msra.gmra.mxu0 %v476_v16  ;;  %109 = vmatmul.f32.vlgmr.msra.gmra.mxu2 %v478_v17 }
  0x2f   :  { %185 = vmatpush.msra.mxu1 %v156_v30  ;;  %292 = vmatpush.msra.mxu3 %v156_v30 }
  0x31   :  { %186 = vmatpush.msra.mxu1 %v155_v31  ;;  %293 = vmatpush.msra.mxu3 %v155_v31 }
  0x33   :  { %187 = vmatpush.msra.mxu1 %v154_v32  ;;  %294 = vmatpush.msra.mxu3 %v154_v32 }
  0x35   :  { %188 = vmatpush.msra.mxu1 %v153_v34  ;;  %295 = vmatpush.msra.mxu3 %v153_v34 }
  0xab   :  { %v107_v35 = vpop.f32.mrf.mxu0 }
  0xac   :  { %v108_v36 = vadd.f32 %v302_v33, %v107_v35 }
  0xae   :  { %v260_v37 = vmul.f32 -1.442695, %v108_v36 }
  0xb0   :  { %304 = vpow2.f32 %v260_v37 }
  0xb1   :  { %v110_v38 = vpop.f32.mrf.mxu2 }
  0xb2   :  { %v111_v39 = vadd.f32 %v302_v33, %v110_v38 }
  0xb4   :  { %v261_v40 = vmul.f32 -1.442695, %v111_v39 }
  0xb6   :  { %v305_v41 = vpop.eup %304  ;;  %306 = vpow2.f32 %v261_v40 }
  0xb7   :  { %v119_v42 = vadd.f32 1.0, %v305_v41 }
  0xb9   :  { %308 = vrcp.f32 %v119_v42  ;;  %v132_v47 = vand.u32 2147483648, %v119_v42  ;;  %vm126_vm0 = vweird.f32 %v119_v42  ;;  %v130_v49 = vand.u32 2147483647, %v119_v42 }
  0xbb   :  { %v133_v52 = vor.u32 1.1754944e-38, %v132_v47  ;;  %vm131_vm3 = vcmp.eq.f32.partialorder %v130_v49, 8.507059e+37 }
  0xbc   :  { %v307_v43 = vpop.eup %306 }
  0xbd   :  { %v120_v44 = vadd.f32 1.0, %v307_v43 }
  0xbf   :  { %v309_v45 = vpop.eup %308  ;;  %310 = vrcp.f32 %v120_v44  ;;  %v147_v58 = vand.u32 2147483648, %v120_v44  ;;  %v145_v61 = vand.u32 2147483647, %v120_v44  ;;  %vm141_vm5 = vweird.f32 %v120_v44 }
  0xc0   :  { %v122_v46 = vmul.f32 %v309_v45, %v119_v42  ;;  %vm127_vm1 = vweird.f32 %v309_v45 }
  0xc1   :  { %vm128_vm2 = vmor %vm126_vm0, %vm127_vm1  ;;  %v148_v63 = vor.u32 1.1754944e-38, %v147_v58  ;;  %vm146_vm7 = vcmp.eq.f32.partialorder %v145_v61, 8.507059e+37 }
  0xc2   :  { %v123_v48 = vsub.f32 1.0, %v122_v46 }
  0xc4   :  { %v124_v50 = vmul.f32 %v309_v45, %v123_v48 }
  0xc5   :  { %v311_v51 = vpop.eup %310 }
  0xc6   :  { %v125_v53 = vadd.f32 %v309_v45, %v124_v50  ;;  %v137_v54 = vmul.f32 %v311_v51, %v120_v44  ;;  %vm142_vm4 = vweird.f32 %v311_v51 }
  0xc7   :  { %vm143_vm6 = vmor %vm141_vm5, %vm142_vm4 }
  0xc8   :  { %v129_v55 = vsel %vm128_vm2, %v309_v45, %v125_v53  ;;  %v138_v56 = vsub.f32 1.0, %v137_v54 }
  0xc9   :  { %v134_v57 = vsel %vm131_vm3, %v133_v52, %v129_v55 }
  0xca   :  { %v151_v59 = vmul.f32 %v134_v57, %v108_v36  ;;  %v139_v60 = vmul.f32 %v311_v51, %v138_v56 }
  0xcc   :  { %189 = vmatmul.f32.vlgmr.msra.gmra.mxu1 %v151_v59  ;;  %v140_v62 = vadd.f32 %v311_v51, %v139_v60 }
  0xce   :  { %v144_v0 = vsel %vm143_vm6, %v311_v51, %v140_v62 }
  0xcf   :  { %v149_v1 = vsel %vm146_vm7, %v148_v63, %v144_v0 }
  0xd0   :  { %v152_v2 = vmul.f32 %v149_v1, %v111_v39 }
  0xd2   :  { %192 = vmatmul.f32.vlgmr.msra.gmra.mxu3 %v152_v2 }
 0x149   :  { %v190_v4 = vpop.f32.mrf.mxu1 }
 0x14a   :  { %v191_v5 = vadd.f32 %v303_v3, %v190_v4 }
 0x14c   :  { %v262_v6 = vmul.f32 -1.442695, %v191_v5 }
 0x14e   :  { %312 = vpow2.f32 %v262_v6 }
 0x154   :  { %v313_v7 = vpop.eup %312 }
 0x155   :  { %v202_v8 = vadd.f32 1.0, %v313_v7  ;;  %v193_v9 = vpop.f32.mrf.mxu3 }
 0x156   :  { %v194_v10 = vadd.f32 %v303_v3, %v193_v9 }
 0x157   :  { %314 = vrcp.f32 %v202_v8  ;;  %v215_v18 = vand.u32 2147483648, %v202_v8  ;;  %v213_v21 = vand.u32 2147483647, %v202_v8  ;;  %vm209_vm9 = vweird.f32 %v202_v8 }
 0x158   :  { %v263_v11 = vmul.f32 -1.442695, %v194_v10 }
 0x159   :  { %v216_v23 = vor.u32 1.1754944e-38, %v215_v18  ;;  %vm214_vm11 = vcmp.eq.f32.partialorder %v213_v21, 8.507059e+37 }
 0x15a   :  { %316 = vpow2.f32 %v263_v11 }
 0x15d   :  { %v315_v12 = vpop.eup %314 }
 0x15e   :  { %v205_v13 = vmul.f32 %v315_v12, %v202_v8  ;;  %vm210_vm8 = vweird.f32 %v315_v12 }
 0x15f   :  { %vm211_vm10 = vmor %vm209_vm9, %vm210_vm8 }
 0x160   :  { %v317_v14 = vpop.eup %316  ;;  %v206_v15 = vsub.f32 1.0, %v205_v13 }
 0x161   :  { %v203_v19 = vadd.f32 1.0, %v317_v14 }
 0x162   :  { %v207_v20 = vmul.f32 %v315_v12, %v206_v15 }
 0x163   :  { %318 = vrcp.f32 %v203_v19  ;;  %v230_v31 = vand.u32 2147483648, %v203_v19  ;;  %v228_v33 = vand.u32 2147483647, %v203_v19  ;;  %vm224_vm13 = vweird.f32 %v203_v19 }
 0x164   :  { %v208_v22 = vadd.f32 %v315_v12, %v207_v20 }
 0x165   :  { %v231_v35 = vor.u32 1.1754944e-38, %v230_v31  ;;  %vm229_vm15 = vcmp.eq.f32.partialorder %v228_v33, 8.507059e+37 }
 0x166   :  { %v212_v24 = vsel %vm211_vm10, %v315_v12, %v208_v22 }
 0x167   :  { %v217_v25 = vsel %vm214_vm11, %v216_v23, %v212_v24 }
 0x168   :  { %v234_v26 = vmul.f32 %v217_v25, %v191_v5 }
 0x169   :  { %v319_v27 = vpop.eup %318 }
 0x16a   :  { %v236_v28 = vadd.f32 %v234_v26, %v476_v16  ;;  %v220_v29 = vmul.f32 %v319_v27, %v203_v19  ;;  %vm225_vm12 = vweird.f32 %v319_v27 }
 0x16b   :  { %vm226_vm14 = vmor %vm224_vm13, %vm225_vm12 }
 0x16c   :  { %238 = vst [vmem:[#allocation8] sm:$0xff] %v236_v28  ;;  %v221_v30 = vsub.f32 1.0, %v220_v29 }
 0x16e   :  { %v222_v32 = vmul.f32 %v319_v27, %v221_v30 }
 0x170   :  { %v223_v34 = vadd.f32 %v319_v27, %v222_v32 }
 0x172   :  { %v227_v36 = vsel %vm226_vm14, %v319_v27, %v223_v34 }
 0x173   :  { %v232_v37 = vsel %vm229_vm15, %v231_v35, %v227_v36 }
 0x174   :  { %v235_v16 = vmul.f32 %v232_v37, %v194_v10 }
 0x176   :  { %v237_v38 = vadd.f32 %v235_v16, %v478_v17 }
 0x178   :  { %239 = vst [vmem:[#allocation8 + $0x8] sm:$0xff] %v237_v38 }
 0x179   :  { %252 = dma.vmem_to_hbm [thread:$0]  %s245_s10, 256, %s247_s13, [#allocation4], %s423_s26, %s423_s26, %s424_s27  }
 0x17a   :  { %420 = dma.done.wait [#allocation4], 256  }
 0x17b   :  { %421 = vsyncadd [#allocation4], 4294967040 }
 0x17c   :  { %257 = vsyncpa [#allocation3], 1 }
 0x17d   :  { %258 = vsyncpa [#allocation6], 1 }
 0x17e   :  { %259 = vsyncpa [#allocation4], 1 }

</bundles_post_ra>
